<compile_context>
chip_gen: v5e
topology: v5e:2x2
jax: 0.10.0
libtpu: 0.0.40
codegen_flags: <defaults>
</compile_context>

<pallas_src>
import functools

import jax
import jax.numpy as jnp
from jax.experimental import pallas as pl
from jax.experimental.pallas import tpu as pltpu


# ----------------------------- fused layer kernel ---------------------------- #

def _gat_layer_kernel(h_ref, w_ref, attn_ref, adjT_ref, nout_ref, nin_ref,
                      scale_ref, shift_ref, o_ref, *,
                      heads, out_feats, negative_slope, apply_relu):
    """One full GATConv layer (+ folded BN/ReLU or bias epilogue) in a single kernel.

    h_ref:     (N, D_in)            input node features
    w_ref:     (D_in, 2*H*F)        [W_fc | W_res] concatenated projection weights
    attn_ref:  (H, H*F)             block-diagonal attn_l (row h holds attn_l[h] in cols h*F:(h+1)*F)
    adjT_ref:  (N_dst, N_src)       transposed dense adjacency (1.0 where edge src->dst)
    nout_ref:  (N, 1)               out-degree ** -0.5   (source-side symmetric norm)
    nin_ref:   (N, 1)               in-degree ** 0.5     (destination-side symmetric norm)
    scale_ref: (1, H*F)             folded BN scale (or ones for the last layer)
    shift_ref: (1, H*F)             folded BN shift (or bias_last for the last layer)
    o_ref:     (N, H*F)             output
    """
    hf = heads * out_feats

    # Fused fc / res_fc projection: one wide MXU matmul.
    proj = jnp.dot(h_ref[...], w_ref[...], preferred_element_type=jnp.float32)  # (N, 2*H*F)
    nout = nout_ref[...]                                    # (N, 1)
    nin = nin_ref[...]                                      # (N, 1)
    fs_all = proj[:, :hf] * nout                            # out-degree norm, hoisted (once per layer)
    res_all = proj[:, hf:]                                  # residual projection (unnormalized)

    adjT = adjT_ref[...]                                    # (N_dst, N_src)
    mask = adjT > 0.0
    neg_big = jnp.float32(-1e30)                            # finite sentinel -> no NaN for 0-in-degree

    # el for ALL heads at once, lane-oriented: (H, H*F) x (N_src, H*F)^T -> (H, N_src)
    el_all = jax.lax.dot_general(attn_ref[...], fs_all, (((1,), (1,)), ((), ())),
                                 preferred_element_type=jnp.float32)
    e_all = jnp.where(el_all >= 0, el_all, negative_slope * el_all)   # LeakyReLU(0.2)

    for hd in range(heads):                                 # heads is a static Python int (<=2)
        fs = fs_all[:, hd * out_feats:(hd + 1) * out_feats]           # (N_src, F)
        e_row = e_all[hd:hd + 1, :]                                   # (1, N_src)

        # edge softmax over incoming edges of each destination (lane reduction).
        scores = jnp.where(mask, e_row, neg_big)                      # (N_dst, N_src)
        m = jnp.max(scores, axis=-1, keepdims=True)                   # (N_dst, 1)
        p = jnp.where(mask, jnp.exp(scores - m), 0.0)
        denom = jnp.sum(p, axis=-1, keepdims=True)                    # (N_dst, 1)
        a = p * pl.reciprocal(jnp.maximum(denom, 1e-20), approx=True)

        # message aggregation: native (N_dst, N_src) @ (N_src, F) MXU contraction.
        rst = jnp.dot(a, fs, preferred_element_type=jnp.float32)      # (N_dst, F)

        # in-degree norm + residual + folded BN affine (+ optional ReLU).
        y = rst * nin + res_all[:, hd * out_feats:(hd + 1) * out_feats]
        y = y * scale_ref[:, hd * out_feats:(hd + 1) * out_feats] \
            + shift_ref[:, hd * out_feats:(hd + 1) * out_feats]
        if apply_relu:
            y = jnp.maximum(y, 0.0)
        o_ref[:, hd * out_feats:(hd + 1) * out_feats] = y


def gat_fused_layer(h, w_cat, attn_bd, adjT, norm_out, norm_in, scale, shift,
                    heads, out_feats, apply_relu, negative_slope=0.2):
    n, d_in = h.shape
    hf = heads * out_feats
    kernel = functools.partial(_gat_layer_kernel, heads=heads, out_feats=out_feats,
                               negative_slope=negative_slope, apply_relu=apply_relu)
    return pl.pallas_call(
        kernel,
        out_shape=jax.ShapeDtypeStruct((n, hf), jnp.float32),
        grid=(1,),
        in_specs=[
            pl.BlockSpec((n, d_in), lambda i: (0, 0)),
            pl.BlockSpec((d_in, 2 * hf), lambda i: (0, 0)),
            pl.BlockSpec((heads, hf), lambda i: (0, 0)),
            pl.BlockSpec((n, n), lambda i: (0, 0)),
            pl.BlockSpec((n, 1), lambda i: (0, 0)),
            pl.BlockSpec((n, 1), lambda i: (0, 0)),
            pl.BlockSpec((1, hf), lambda i: (0, 0)),
            pl.BlockSpec((1, hf), lambda i: (0, 0)),
        ],
        out_specs=pl.BlockSpec((n, hf), lambda i: (0, 0)),
        compiler_params=pltpu.CompilerParams(dimension_semantics=("arbitrary",)),
    )(h, w_cat, attn_bd, adjT, norm_out, norm_in, scale, shift)


# --------------------------- parameters & forward ---------------------------- #

def _xavier_normal(key, shape, fan_in, fan_out, gain):
    std = gain * (2.0 / (fan_in + fan_out)) ** 0.5
    return (std * jax.random.normal(key, shape)).astype(jnp.float32)


def init_gat_params(key, info):
    gain = 2.0 ** 0.5  # nn.init.calculate_gain('relu')
    layers = []
    n_layers = info["n_layers"]
    for i in range(n_layers):
        in_h = info["num_heads"] * info["hid_dim"] if i > 0 else info["in_dim"]
        out_h = info["hid_dim"] if i < n_layers - 1 else info["out_dim"]
        heads = info["num_heads"] if i < n_layers - 1 else 1
        key, k1, k2, k3 = jax.random.split(key, 4)
        fc_w = _xavier_normal(k1, (in_h, heads * out_h), in_h, heads * out_h, gain)
        res_w = _xavier_normal(k3, (in_h, heads * out_h), in_h, heads * out_h, gain)
        attn_l = _xavier_normal(k2, (heads, out_h), heads * out_h, out_h, gain)
        # block-diagonal attn: row h holds attn_l[h] in columns h*F:(h+1)*F
        attn_bd = jnp.zeros((heads, heads * out_h), jnp.float32)
        for hd in range(heads):
            attn_bd = attn_bd.at[hd, hd * out_h:(hd + 1) * out_h].set(attn_l[hd])
        layer = {
            "num_heads": heads,
            "out_feats": out_h,
            "w_cat": jnp.concatenate([fc_w, res_w], axis=1),   # (in, 2*H*F)
            "attn_bd": attn_bd,
        }
        if i < n_layers - 1:
            c = heads * out_h
            layer.update(
                bn_gamma=jnp.ones((c,), jnp.float32),
                bn_beta=jnp.zeros((c,), jnp.float32),
                bn_mean=jnp.zeros((c,), jnp.float32),
                bn_var=jnp.ones((c,), jnp.float32),
            )
        layers.append(layer)
    return {"layers": layers,
            "bias_last": jnp.zeros((info["out_dim"],), jnp.float32)}


def gat_forward(params, adj, feat, info, bn_eps=1e-5):
    n = feat.shape[0]
    adjT = adj.T                                             # adjT[dst, src]
    out_deg = jnp.maximum(jnp.sum(adjT, axis=0), 1.0)        # out-degree per src node
    in_deg = jnp.maximum(jnp.sum(adjT, axis=1), 1.0)         # in-degree per dst node
    norm_out = (out_deg ** -0.5).reshape(n, 1).astype(jnp.float32)
    norm_in = (in_deg ** 0.5).reshape(n, 1).astype(jnp.float32)

    h = feat                                                 # input_drop: identity (eval)
    n_layers = info["n_layers"]
    for i, layer in enumerate(params["layers"]):
        heads, f = layer["num_heads"], layer["out_feats"]
        hf = heads * f
        if i < n_layers - 1:
            # fold eval-mode BatchNorm into a per-channel affine; ReLU stays in-kernel.
            inv = jax.lax.rsqrt(layer["bn_var"] + bn_eps)
            scale = (layer["bn_gamma"] * inv).reshape(1, hf)
            shift = (layer["bn_beta"] - layer["bn_mean"] * layer["bn_gamma"] * inv).reshape(1, hf)
            relu = True
        else:
            # last layer: heads == 1 -> mean over heads is identity; fold bias_last.
            scale = jnp.ones((1, hf), jnp.float32)
            shift = params["bias_last"].reshape(1, hf)
            relu = False
        h = gat_fused_layer(h, layer["w_cat"], layer["attn_bd"], adjT,
                            norm_out, norm_in, scale, shift,
                            heads, f, relu)
    return h                                                 # (N, out_dim)


# ----------------------------------- main ------------------------------------ #

if __name__ == "__main__":
    info_dict = dict(in_dim=32, hid_dim=16, out_dim=8, n_layers=3, num_heads=2,
                     attn_drop=0.0, edge_drop=0.0, input_drop=0.0, dropout=0.0)

    key = jax.random.PRNGKey(0)
    k_graph, k_feat, k_params = jax.random.split(key, 3)

    N = 64
    # Random undirected graph with self-loops (guarantees no zero in-degree).
    rand = (jax.random.uniform(k_graph, (N, N)) < 0.1).astype(jnp.float32)
    adj = jnp.clip(rand + rand.T + jnp.eye(N, dtype=jnp.float32), 0.0, 1.0)

    feat = jax.random.normal(k_feat, (N, info_dict["in_dim"]), dtype=jnp.float32)
    params = init_gat_params(k_params, info_dict)

    out = gat_forward(params, adj, feat, info_dict)
    out = jax.block_until_ready(out)

    assert out.shape == (N, info_dict["out_dim"])
    assert bool(jnp.all(jnp.isfinite(out)))
    print("KERNEL_OK")
</pallas_src>

<mosaic_0001>
module attributes {stable_mosaic.version = 11 : i64} {
  func.func @_gat_layer_kernel(%arg0: i32, %arg1: memref<64x32xf32, #tpu.memory_space<vmem>>, %arg2: memref<32x64xf32, #tpu.memory_space<vmem>>, %arg3: memref<2x32xf32, #tpu.memory_space<vmem>>, %arg4: memref<64x64xf32, #tpu.memory_space<vmem>>, %arg5: memref<64x1xf32, #tpu.memory_space<vmem>>, %arg6: memref<64x1xf32, #tpu.memory_space<vmem>>, %arg7: memref<1x32xf32, #tpu.memory_space<vmem>>, %arg8: memref<1x32xf32, #tpu.memory_space<vmem>>, %arg9: memref<64x32xf32, #tpu.memory_space<vmem>>) attributes {dimension_semantics = [#tpu.dimension_semantics<arbitrary>], iteration_bounds = array<i64: 1>, scalar_prefetch = 0 : i64, scratch_operands = 0 : i64, tpu.core_type = #tpu.core_type<tc>, window_params = [{pipeline_mode = #tpu.pipeline_mode<synchronous>, transform_indices = @transform_0, window_bounds = array<i64: 64, 32>}, {pipeline_mode = #tpu.pipeline_mode<synchronous>, transform_indices = @transform_1, window_bounds = array<i64: 32, 64>}, {pipeline_mode = #tpu.pipeline_mode<synchronous>, transform_indices = @transform_2, window_bounds = array<i64: 2, 32>}, {pipeline_mode = #tpu.pipeline_mode<synchronous>, transform_indices = @transform_3, window_bounds = array<i64: 64, 64>}, {pipeline_mode = #tpu.pipeline_mode<synchronous>, transform_indices = @transform_4, window_bounds = array<i64: 64, 1>}, {pipeline_mode = #tpu.pipeline_mode<synchronous>, transform_indices = @transform_5, window_bounds = array<i64: 64, 1>}, {pipeline_mode = #tpu.pipeline_mode<synchronous>, transform_indices = @transform_6, window_bounds = array<i64: 1, 32>}, {pipeline_mode = #tpu.pipeline_mode<synchronous>, transform_indices = @transform_7, window_bounds = array<i64: 1, 32>}, {pipeline_mode = #tpu.pipeline_mode<synchronous>, transform_indices = @transform_8, window_bounds = array<i64: 64, 32>}]} {
    %c0 = arith.constant 0 : index
    %c0_0 = arith.constant 0 : index
    %0 = vector.load %arg1[%c0, %c0_0] : memref<64x32xf32, #tpu.memory_space<vmem>>, vector<64x32xf32>
    %c0_1 = arith.constant 0 : index
    %c0_2 = arith.constant 0 : index
    %1 = vector.load %arg2[%c0_1, %c0_2] : memref<32x64xf32, #tpu.memory_space<vmem>>, vector<32x64xf32>
    %cst = arith.constant dense<0.000000e+00> : vector<64x64xf32>
    %2 = tpu.matmul %0, %1, %cst {dimension_numbers = #tpu.dot_dimension_numbers<[1], [0], [0], [1], [0, 0, 1, 1], [], []>} : vector<64x32xf32>, vector<32x64xf32>, vector<64x64xf32> -> vector<64x64xf32>
    %c0_3 = arith.constant 0 : index
    %c0_4 = arith.constant 0 : index
    %3 = vector.load %arg5[%c0_3, %c0_4] : memref<64x1xf32, #tpu.memory_space<vmem>>, vector<64x1xf32>
    %c0_5 = arith.constant 0 : index
    %c0_6 = arith.constant 0 : index
    %4 = vector.load %arg6[%c0_5, %c0_6] : memref<64x1xf32, #tpu.memory_space<vmem>>, vector<64x1xf32>
    %5 = vector.extract_strided_slice %2 {offsets = [0, 0], sizes = [64, 32], strides = [1, 1]} : vector<64x64xf32> to vector<64x32xf32>
    %6 = vector.broadcast %3 : vector<64x1xf32> to vector<64x32xf32>
    %7 = arith.mulf %5, %6 : vector<64x32xf32>
    %8 = vector.extract_strided_slice %2 {offsets = [0, 32], sizes = [64, 32], strides = [1, 1]} : vector<64x64xf32> to vector<64x32xf32>
    %c0_7 = arith.constant 0 : index
    %c0_8 = arith.constant 0 : index
    %9 = vector.load %arg4[%c0_7, %c0_8] : memref<64x64xf32, #tpu.memory_space<vmem>>, vector<64x64xf32>
    %cst_9 = arith.constant 0.000000e+00 : f32
    %10 = vector.broadcast %cst_9 : f32 to vector<64x64xf32>
    %11 = arith.cmpf ogt, %9, %10 : vector<64x64xf32>
    %c0_10 = arith.constant 0 : index
    %c0_11 = arith.constant 0 : index
    %12 = vector.load %arg3[%c0_10, %c0_11] : memref<2x32xf32, #tpu.memory_space<vmem>>, vector<2x32xf32>
    %cst_12 = arith.constant dense<0.000000e+00> : vector<2x64xf32>
    %13 = tpu.matmul %12, %7, %cst_12 {dimension_numbers = #tpu.dot_dimension_numbers<[1], [1], [0], [0], [0, 0, 1, 0], [], []>} : vector<2x32xf32>, vector<64x32xf32>, vector<2x64xf32> -> vector<2x64xf32>
    %cst_13 = arith.constant 0.000000e+00 : f32
    %14 = vector.broadcast %cst_13 : f32 to vector<2x64xf32>
    %15 = arith.cmpf oge, %13, %14 : vector<2x64xf32>
    %cst_14 = arith.constant 2.000000e-01 : f32
    %16 = vector.broadcast %cst_14 : f32 to vector<2x64xf32>
    %17 = arith.mulf %16, %13 : vector<2x64xf32>
    %18 = arith.select %15, %13, %17 : vector<2x64xi1>, vector<2x64xf32>
    %19 = vector.extract_strided_slice %7 {offsets = [0, 0], sizes = [64, 16], strides = [1, 1]} : vector<64x32xf32> to vector<64x16xf32>
    %20 = vector.extract_strided_slice %18 {offsets = [0, 0], sizes = [1, 64], strides = [1, 1]} : vector<2x64xf32> to vector<1x64xf32>
    %cst_15 = arith.constant -1.000000e+30 : f32
    %21 = vector.shape_cast %20 : vector<1x64xf32> to vector<1x64xf32>
    %22 = vector.broadcast %21 : vector<1x64xf32> to vector<64x64xf32>
    %23 = vector.broadcast %cst_15 : f32 to vector<64x64xf32>
    %24 = arith.select %11, %22, %23 : vector<64x64xi1>, vector<64x64xf32>
    %cst_16 = arith.constant dense<0xFF800000> : vector<64xf32>
    %25 = vector.multi_reduction <maximumf>, %24, %cst_16 [1] : vector<64x64xf32> to vector<64xf32>
    %26 = vector.shape_cast %25 : vector<64xf32> to vector<64x1xf32>
    %27 = vector.broadcast %26 : vector<64x1xf32> to vector<64x64xf32>
    %28 = arith.subf %24, %27 : vector<64x64xf32>
    %29 = math.exp %28 : vector<64x64xf32>
    %cst_17 = arith.constant 0.000000e+00 : f32
    %30 = vector.broadcast %cst_17 : f32 to vector<64x64xf32>
    %31 = arith.select %11, %29, %30 : vector<64x64xi1>, vector<64x64xf32>
    %cst_18 = arith.constant dense<0.000000e+00> : vector<64xf32>
    %32 = vector.multi_reduction <add>, %31, %cst_18 [1] : vector<64x64xf32> to vector<64xf32>
    %33 = vector.shape_cast %32 : vector<64xf32> to vector<64x1xf32>
    %cst_19 = arith.constant 9.99999968E-21 : f32
    %34 = vector.broadcast %cst_19 : f32 to vector<64x1xf32>
    %35 = arith.maximumf %33, %34 : vector<64x1xf32>
    %36 = tpu.reciprocal %35 {approx = true} : vector<64x1xf32> -> vector<64x1xf32>
    %37 = vector.broadcast %36 : vector<64x1xf32> to vector<64x64xf32>
    %38 = arith.mulf %31, %37 : vector<64x64xf32>
    %cst_20 = arith.constant dense<0.000000e+00> : vector<64x16xf32>
    %39 = tpu.matmul %38, %19, %cst_20 {dimension_numbers = #tpu.dot_dimension_numbers<[1], [0], [0], [1], [0, 0, 1, 1], [], []>} : vector<64x64xf32>, vector<64x16xf32>, vector<64x16xf32> -> vector<64x16xf32>
    %40 = vector.broadcast %4 : vector<64x1xf32> to vector<64x16xf32>
    %41 = arith.mulf %39, %40 : vector<64x16xf32>
    %42 = vector.extract_strided_slice %8 {offsets = [0, 0], sizes = [64, 16], strides = [1, 1]} : vector<64x32xf32> to vector<64x16xf32>
    %43 = arith.addf %41, %42 : vector<64x16xf32>
    %c0_21 = arith.constant 0 : index
    %c0_22 = arith.constant 0 : index
    %44 = vector.load %arg7[%c0_21, %c0_22] : memref<1x32xf32, #tpu.memory_space<vmem>>, vector<1x16xf32>
    %45 = vector.broadcast %44 : vector<1x16xf32> to vector<64x16xf32>
    %46 = arith.mulf %43, %45 : vector<64x16xf32>
    %c0_23 = arith.constant 0 : index
    %c0_24 = arith.constant 0 : index
    %47 = vector.load %arg8[%c0_23, %c0_24] : memref<1x32xf32, #tpu.memory_space<vmem>>, vector<1x16xf32>
    %48 = vector.broadcast %47 : vector<1x16xf32> to vector<64x16xf32>
    %49 = arith.addf %46, %48 : vector<64x16xf32>
    %cst_25 = arith.constant 0.000000e+00 : f32
    %50 = vector.broadcast %cst_25 : f32 to vector<64x16xf32>
    %51 = arith.maximumf %49, %50 : vector<64x16xf32>
    %c0_26 = arith.constant 0 : index
    %c0_27 = arith.constant 0 : index
    %52 = vector.load %arg9[%c0_26, %c0_27] : memref<64x32xf32, #tpu.memory_space<vmem>>, vector<64x16xf32>
    tpu.vector_store %arg9[%c0_26, %c0_27], %51 {strides = array<i32>} : memref<64x32xf32, #tpu.memory_space<vmem>>, vector<64x16xf32>,
    %53 = vector.extract_strided_slice %7 {offsets = [0, 16], sizes = [64, 16], strides = [1, 1]} : vector<64x32xf32> to vector<64x16xf32>
    %54 = vector.extract_strided_slice %18 {offsets = [1, 0], sizes = [1, 64], strides = [1, 1]} : vector<2x64xf32> to vector<1x64xf32>
    %cst_28 = arith.constant -1.000000e+30 : f32
    %55 = vector.shape_cast %54 : vector<1x64xf32> to vector<1x64xf32>
    %56 = vector.broadcast %55 : vector<1x64xf32> to vector<64x64xf32>
    %57 = vector.broadcast %cst_28 : f32 to vector<64x64xf32>
    %58 = arith.select %11, %56, %57 : vector<64x64xi1>, vector<64x64xf32>
    %cst_29 = arith.constant dense<0xFF800000> : vector<64xf32>
    %59 = vector.multi_reduction <maximumf>, %58, %cst_29 [1] : vector<64x64xf32> to vector<64xf32>
    %60 = vector.shape_cast %59 : vector<64xf32> to vector<64x1xf32>
    %61 = vector.broadcast %60 : vector<64x1xf32> to vector<64x64xf32>
    %62 = arith.subf %58, %61 : vector<64x64xf32>
    %63 = math.exp %62 : vector<64x64xf32>
    %cst_30 = arith.constant 0.000000e+00 : f32
    %64 = vector.broadcast %cst_30 : f32 to vector<64x64xf32>
    %65 = arith.select %11, %63, %64 : vector<64x64xi1>, vector<64x64xf32>
    %cst_31 = arith.constant dense<0.000000e+00> : vector<64xf32>
    %66 = vector.multi_reduction <add>, %65, %cst_31 [1] : vector<64x64xf32> to vector<64xf32>
    %67 = vector.shape_cast %66 : vector<64xf32> to vector<64x1xf32>
    %cst_32 = arith.constant 9.99999968E-21 : f32
    %68 = vector.broadcast %cst_32 : f32 to vector<64x1xf32>
    %69 = arith.maximumf %67, %68 : vector<64x1xf32>
    %70 = tpu.reciprocal %69 {approx = true} : vector<64x1xf32> -> vector<64x1xf32>
    %71 = vector.broadcast %70 : vector<64x1xf32> to vector<64x64xf32>
    %72 = arith.mulf %65, %71 : vector<64x64xf32>
    %cst_33 = arith.constant dense<0.000000e+00> : vector<64x16xf32>
    %73 = tpu.matmul %72, %53, %cst_33 {dimension_numbers = #tpu.dot_dimension_numbers<[1], [0], [0], [1], [0, 0, 1, 1], [], []>} : vector<64x64xf32>, vector<64x16xf32>, vector<64x16xf32> -> vector<64x16xf32>
    %74 = vector.broadcast %4 : vector<64x1xf32> to vector<64x16xf32>
    %75 = arith.mulf %73, %74 : vector<64x16xf32>
    %76 = vector.extract_strided_slice %8 {offsets = [0, 16], sizes = [64, 16], strides = [1, 1]} : vector<64x32xf32> to vector<64x16xf32>
    %77 = arith.addf %75, %76 : vector<64x16xf32>
    %c0_34 = arith.constant 0 : index
    %c16 = arith.constant 16 : index
    %78 = vector.load %arg7[%c0_34, %c16] : memref<1x32xf32, #tpu.memory_space<vmem>>, vector<1x16xf32>
    %79 = vector.broadcast %78 : vector<1x16xf32> to vector<64x16xf32>
    %80 = arith.mulf %77, %79 : vector<64x16xf32>
    %c0_35 = arith.constant 0 : index
    %c16_36 = arith.constant 16 : index
    %81 = vector.load %arg8[%c0_35, %c16_36] : memref<1x32xf32, #tpu.memory_space<vmem>>, vector<1x16xf32>
    %82 = vector.broadcast %81 : vector<1x16xf32> to vector<64x16xf32>
    %83 = arith.addf %80, %82 : vector<64x16xf32>
    %cst_37 = arith.constant 0.000000e+00 : f32
    %84 = vector.broadcast %cst_37 : f32 to vector<64x16xf32>
    %85 = arith.maximumf %83, %84 : vector<64x16xf32>
    %c0_38 = arith.constant 0 : index
    %c16_39 = arith.constant 16 : index
    %86 = vector.load %arg9[%c0_38, %c16_39] : memref<64x32xf32, #tpu.memory_space<vmem>>, vector<64x16xf32>
    tpu.vector_store %arg9[%c0_38, %c16_39], %85 {strides = array<i32>} : memref<64x32xf32, #tpu.memory_space<vmem>>, vector<64x16xf32>,
    return
  }
  func.func @transform_0(%arg0: i32) -> (i32, i32) {
    %c0_i32 = arith.constant 0 : i32
    %c0_i32_0 = arith.constant 0 : i32
    %c0_i32_1 = arith.constant 0 : i32
    return %c0_i32, %c0_i32_0 : i32, i32
  }
  func.func @transform_1(%arg0: i32) -> (i32, i32) {
    %c0_i32 = arith.constant 0 : i32
    %c0_i32_0 = arith.constant 0 : i32
    %c0_i32_1 = arith.constant 0 : i32
    return %c0_i32, %c0_i32_0 : i32, i32
  }
  func.func @transform_2(%arg0: i32) -> (i32, i32) {
    %c0_i32 = arith.constant 0 : i32
    %c0_i32_0 = arith.constant 0 : i32
    %c0_i32_1 = arith.constant 0 : i32
    return %c0_i32, %c0_i32_0 : i32, i32
  }
  func.func @transform_3(%arg0: i32) -> (i32, i32) {
    %c0_i32 = arith.constant 0 : i32
    %c0_i32_0 = arith.constant 0 : i32
    %c0_i32_1 = arith.constant 0 : i32
    return %c0_i32, %c0_i32_0 : i32, i32
  }
  func.func @transform_4(%arg0: i32) -> (i32, i32) {
    %c0_i32 = arith.constant 0 : i32
    %c0_i32_0 = arith.constant 0 : i32
    %c0_i32_1 = arith.constant 0 : i32
    return %c0_i32, %c0_i32_0 : i32, i32
  }
  func.func @transform_5(%arg0: i32) -> (i32, i32) {
    %c0_i32 = arith.constant 0 : i32
    %c0_i32_0 = arith.constant 0 : i32
    %c0_i32_1 = arith.constant 0 : i32
    return %c0_i32, %c0_i32_0 : i32, i32
  }
  func.func @transform_6(%arg0: i32) -> (i32, i32) {
    %c0_i32 = arith.constant 0 : i32
    %c0_i32_0 = arith.constant 0 : i32
    %c0_i32_1 = arith.constant 0 : i32
    return %c0_i32, %c0_i32_0 : i32, i32
  }
  func.func @transform_7(%arg0: i32) -> (i32, i32) {
    %c0_i32 = arith.constant 0 : i32
    %c0_i32_0 = arith.constant 0 : i32
    %c0_i32_1 = arith.constant 0 : i32
    return %c0_i32, %c0_i32_0 : i32, i32
  }
  func.func @transform_8(%arg0: i32) -> (i32, i32) {
    %c0_i32 = arith.constant 0 : i32
    %c0_i32_0 = arith.constant 0 : i32
    %c0_i32_1 = arith.constant 0 : i32
    return %c0_i32, %c0_i32_0 : i32, i32
  }
}

</mosaic_0001>

<bundles_post_ra>
// kernel: tpu_custom_call.1
= control target key start
LH: loop header
LB: loop body
LE: loop exit
PB: predicated region body
PF: predicated region fallthrough
CT: control target
= control target key end

     0   :  { %v1014_v1 = vmov 0   ;;  %vm41_vm0 = vcmask 261120   ;;  %vm247_vm5 = vcmask 523264   ;;  %s1015_s12 = smov 112   ;;  %s1017_s23 = smov 96   ;;  %vm537_vm11 = vcmask 130048   ;;  %s1735_s1 = inlined_call_operand.vmem [shape: f32[32,64], index: 1, kind: input, shape index: {}]   ;;  %s1736_s4 = inlined_call_operand.vmem [shape: f32[64,1], index: 4, kind: input, shape index: {}]   ;;  %s1737_s0 = inlined_call_operand.vmem [shape: f32[64,32], index: 0, kind: input, shape index: {}]   ;;  %s1738_s2 = inlined_call_operand.vmem [shape: f32[2,32], index: 2, kind: input, shape index: {}]   ;;  %s1739_s3 = inlined_call_operand.vmem [shape: f32[64,64], index: 3, kind: input, shape index: {}]   ;;  %s1740_s7 = inlined_call_operand.vmem [shape: f32[1,32], index: 7, kind: input, shape index: {}]   ;;  %s1741_s6 = inlined_call_operand.vmem [shape: f32[1,32], index: 6, kind: input, shape index: {}]   ;;  %s1742_s5 = inlined_call_operand.vmem [shape: f32[64,1], index: 5, kind: input, shape index: {}]   ;;  %s1743_s8 = inlined_call_operand.vmem [shape: f32[64,32], index: 8, kind: output, shape index: {}]  }
   0x1   :  { %v40_v0 = vld [vmem:[%s1735_s1 + $0x18] sm:$0xff]  ;;  %924 = vset.pattern.permute.xlu1 %v1014_v1  ;;  %v112_v2 = vld [vmem:[%s1736_s4 + $0x28] sm:$0xff]  ;;  %v39_v3 = vld [vmem:[%s1735_s1 + $0x10] sm:$0xff]  ;;  %923 = vset.pattern.permute.xlu0 %v1014_v1  ;;  %vm856_vm12 = vcmask 261248  }
   0x2   :  { %78 = vmatpush.msra.mxu0 %v40_v0  ;;  %150 = vperm.xlu1 %924, %v112_v2   ;;  %v38_v4 = vld [vmem:[%s1735_s1 + $0x8] sm:$0xff]  ;;  %v114_v5 = vld [vmem:[%s1736_s4 + $0x38] sm:$0xff]  ;;  %v37_v6 = vld [vmem:[%s1735_s1] sm:$0xff] }
   0x3   :  { %925 = vset.pattern.permute.xlu2 %v1014_v1  ;;  %160 = vperm.xlu0 %923, %v114_v5   ;;  %v29_v7 = vld [vmem:[%s1737_s0] sm:$0xff]  ;;  %v113_v9 = vld [vmem:[%s1736_s4 + $0x30] sm:$0xff]  ;;  %v30_v10 = vld [vmem:[%s1737_s0 + $0x8] sm:$0xff] }
   0x4   :  { %79 = vmatpush.msra.mxu0 %v39_v3  ;;  %v111_v8 = vld [vmem:[%s1736_s4 + $0x20] sm:$0xff]  ;;  %v108_v12 = vld [vmem:[%s1736_s4 + $0x8] sm:$0xff]  ;;  %v110_v13 = vld [vmem:[%s1736_s4 + $0x18] sm:$0xff] }
   0x5   :  { %v107_v11 = vld [vmem:[%s1736_s4] sm:$0xff]  ;;  %140 = vperm.xlu2 %925, %v110_v13   ;;  %v31_v14 = vld [vmem:[%s1737_s0 + $0x10] sm:$0xff]  ;;  %v32_v16 = vld [vmem:[%s1737_s0 + $0x18] sm:$0xff] }
   0x6   :  { %80 = vmatpush.msra.mxu0 %v38_v4  ;;  %v109_v15 = vld [vmem:[%s1736_s4 + $0x10] sm:$0xff]  ;;  %v33_v17 = vld [vmem:[%s1737_s0 + $0x20] sm:$0xff]  ;;  %v34_v18 = vld [vmem:[%s1737_s0 + $0x28] sm:$0xff] }
   0x7   :  { %v35_v19 = vld [vmem:[%s1737_s0 + $0x30] sm:$0xff]  ;;  %v36_v20 = vld [vmem:[%s1737_s0 + $0x38] sm:$0xff]  ;;  %v187_v47 = vld [vmem:[%s1738_s2] sm:$0x3]  ;;  %s1016_s2 = smov 80  }
   0x8   :  { %81 = vmatpush.msra.mxu0 %v37_v6  ;;  %v1215_v49 = vld [vmem:[%s1739_s3 + $0x18] sm:$0xff]  ;;  %v1220_v50 = vld [vmem:[%s1739_s3 + $0x10] sm:$0xff]  ;;  %v1225_v51 = vld [vmem:[%s1739_s3 + $0x8] sm:$0xff] }
   0x9   :  { %869 = vmatmul.msk.f32.vlgmr.msra.gmra.mxu0 %vm41_vm0, %v29_v7  ;;  %vm182_vm2 = vcmp.gt.f32.partialorder %v1215_v49, 0.0  ;;  %vm181_vm3 = vcmp.gt.f32.partialorder %v1220_v50, 0.0  ;;  %vm180_vm4 = vcmp.gt.f32.partialorder %v1225_v51, 0.0  ;;  %v1233_v55 = vld [vmem:[%s1739_s3 + $0x30] sm:$0xff]  ;;  %v1256_v62 = vld [vmem:[%s1739_s3 + $0x20] sm:$0xff]  ;;  %v1280_v5 = vld [vmem:[%s1739_s3 + $0x28] sm:$0xff] }
   0xa   :  { %145 = vperm.xlu1 %924, %v111_v8   ;;  %vm185_vm6 = vcmp.gt.f32.partialorder %v1233_v55, 0.0  ;;  %vm183_vm7 = vcmp.gt.f32.partialorder %v1256_v62, 0.0  ;;  %vm184_vm8 = vcmp.gt.f32.partialorder %v1280_v5, 0.0  ;;  %v1289_v8 = vld [vmem:[%s1739_s3] sm:$0xff]  ;;  %v1314_v13 = vld [vmem:[%s1739_s3 + $0x38] sm:$0xff]  ;;  %v116_v55 = vld [vmem:[%s1742_s5 + $0x8] sm:$0xff] }
   0xb   :  { %155 = vperm.xlu0 %923, %v113_v9   ;;  %vm179_vm9 = vcmp.gt.f32.partialorder %v1289_v8, 0.0  ;;  %vm186_vm10 = vcmp.gt.f32.partialorder %v1314_v13, 0.0 }
   0xd   :  { %135 = vperm.xlu2 %925, %v109_v15  }
  0x11   :  { %870 = vmatmul.msk.f32.gmra.mxu0 %vm41_vm0, %v30_v10 }
  0x12   :  { %125 = vperm.xlu1 %924, %v107_v11  }
  0x13   :  { %130 = vperm.xlu0 %923, %v108_v12  }
  0x19   :  { %871 = vmatmul.msk.f32.gmra.mxu0 %vm41_vm0, %v31_v14 }
  0x21   :  { %872 = vmatmul.msk.f32.gmra.mxu0 %vm41_vm0, %v32_v16 }
  0x29   :  { %873 = vmatmul.msk.f32.gmra.mxu0 %vm41_vm0, %v33_v17 }
  0x31   :  { %874 = vmatmul.msk.f32.gmra.mxu0 %vm41_vm0, %v34_v18 }
  0x39   :  { %875 = vmatmul.msk.f32.gmra.mxu0 %vm41_vm0, %v35_v19 }
  0x41   :  { %876 = vmatmul.msk.f32.gmra.mxu0 %vm41_vm0, %v36_v20 }
  0x5f   :  { %v141_v34 = vpop.permute.xlu2 %140 }
  0x67   :  { %v136_v40 = vpop.permute.xlu2 %135 }
  0x74   :  { %v151_v25 = vpop.permute.xlu1 %150 }
  0x75   :  { %v161_v32 = vpop.permute.xlu0 %160 }
  0x7c   :  { %v146_v27 = vpop.permute.xlu1 %145 }
  0x7d   :  { %v156_v35 = vpop.permute.xlu0 %155 }
  0x84   :  { %v126_v44 = vpop.permute.xlu1 %125 }
  0x85   :  { %v131_v42 = vpop.permute.xlu0 %130 }
  0x86   :  { %v1132_v21 = vpop.f32.mrf.mxu0 }
  0x87   :  { %v1186_v46 = vmul.f32 %v126_v44, %v1132_v21 }
  0x8e   :  { %v1134_v22 = vpop.f32.mrf.mxu0 }
  0x8f   :  { %v1182_v45 = vmul.f32 %v131_v42, %v1134_v22 }
  0x96   :  { %v1136_v23 = vpop.f32.mrf.mxu0 }
  0x97   :  { %v1176_v43 = vmul.f32 %v136_v40, %v1136_v23 }
  0x9e   :  { %v1138_v24 = vpop.f32.mrf.mxu0 }
  0x9f   :  { %v1172_v41 = vmul.f32 %v141_v34, %v1138_v24 }
  0xa1   :  { %v936_v12 = vpack.i.bf16 %v1176_v43, %v1172_v41 }
  0xa6   :  { %v1140_v26 = vpop.f32.mrf.mxu0 }
  0xa7   :  { %v1145_v29 = vmul.f32 %v146_v27, %v1140_v26 }
  0xae   :  { %v1142_v28 = vpop.f32.mrf.mxu0 }
  0xaf   :  { %v1148_v30 = vmul.f32 %v151_v25, %v1142_v28 }
  0xb1   :  { %v931_v31 = vpack.i.bf16 %v1145_v29, %v1148_v30 }
  0xb6   :  { %v1152_v33 = vpop.f32.mrf.mxu0 }
  0xb7   :  { %v1157_v37 = vmul.f32 %v156_v35, %v1152_v33 }
  0xbe   :  { %v1154_v36 = vpop.f32.mrf.mxu0 }
  0xbf   :  { %v1160_v38 = vmul.f32 %v161_v32, %v1154_v36 }
  0xc1   :  { %877 = vmatpush.xpose.msk.msra.mxu1 %vm41_vm0, %v1160_v38  ;;  %902 = vmatpush.msra.mxu2 %v1160_v38  ;;  %v926_v39 = vpack.i.bf16 %v1157_v37, %v1160_v38 }
  0xc3   :  { %903 = vmatpush.msra.mxu2 %v1157_v37 }
  0xc5   :  { %878 = vmatpush.xpose.msk.msra.mxu1 %vm41_vm0, %v1157_v37  ;;  %904 = vmatpush.msra.mxu2 %v1148_v30 }
  0xc7   :  { %905 = vmatpush.msra.mxu2 %v1145_v29 }
  0xc9   :  { %879 = vmatpush.xpose.msk.msra.mxu1 %vm41_vm0, %v1148_v30  ;;  %906 = vmatpush.msra.mxu2 %v1172_v41 }
  0xcb   :  { %907 = vmatpush.msra.mxu2 %v1176_v43 }
  0xcd   :  { %880 = vmatpush.xpose.msk.msra.mxu1 %vm41_vm0, %v1145_v29  ;;  %908 = vmatpush.msra.mxu2 %v1182_v45 }
  0xcf   :  { %909 = vmatpush.msra.mxu2 %v1186_v46 }
  0xd1   :  { %881 = vmatpush.xpose.msk.msra.mxu1 %vm41_vm0, %v1172_v41 }
  0xd5   :  { %882 = vmatpush.xpose.msk.msra.mxu1 %vm41_vm0, %v1176_v43 }
  0xd9   :  { %883 = vmatpush.xpose.msk.msra.mxu1 %vm41_vm0, %v1182_v45 }
  0xdd   :  { %884 = vmatpush.xpose.msk.msra.mxu1 %vm41_vm0, %v1186_v46 }
  0xe0   :  { %885 = vmatmul.msk.f32.vlgmr.msra.gmra.mxu1 %vm41_vm0, %v187_v47 }
  0xe1   :  { %384 = vmatpush.msrb.mxu1 %v1160_v38 }
  0xe3   :  { %385 = vmatpush.msrb.mxu1 %v1157_v37 }
  0xe5   :  { %386 = vmatpush.msrb.mxu1 %v1148_v30 }
  0xe7   :  { %387 = vmatpush.msrb.mxu1 %v1145_v29 }
  0xe9   :  { %388 = vmatpush.msrb.mxu1 %v1172_v41 }
  0xeb   :  { %389 = vmatpush.msrb.mxu1 %v1176_v43 }
  0xed   :  { %390 = vmatpush.msrb.mxu1 %v1182_v45 }
  0xef   :  { %391 = vmatpush.msrb.mxu1 %v1186_v46 }
 0x15d   :  { %v232_v48 = vpop.f32.mrf.mxu1 }
 0x15e   :  { %vm235_vm1 = vcmp.ge.f32.partialorder %v232_v48, 0.0  ;;  %v236_v52 = vmul.f32 0.2, %v232_v48 }
 0x160   :  { %v237_v53 = vsel %vm235_vm1, %v232_v48, %v236_v52 }
 0x161   :  { %v546_v54 = vperm.slane %v237_v53, 1  ;;  %v1258_v63 = vperm.slane %v237_v53, 0 }
 0x163   :  { %v1237_v56 = vsel %vm182_vm2, %v546_v54, -1e+30  ;;  %v1241_v57 = vsel %vm181_vm3, %v546_v54, -1e+30  ;;  %v1245_v58 = vsel %vm180_vm4, %v546_v54, -1e+30 }
 0x164   :  { %v564_v59 = vsel %vm247_vm5, %v1237_v56, -inf  ;;  %v561_v60 = vsel %vm247_vm5, %v1241_v57, -inf  ;;  %v558_v61 = vsel %vm247_vm5, %v1245_v58, -inf  ;;  %v1264_v0 = vsel %vm185_vm6, %v546_v54, -1e+30 }
 0x165   :  { %565 = vmax.xlane.f32.xlu1 %v564_v59  ;;  %562 = vmax.xlane.f32.xlu0 %v561_v60  ;;  %v1269_v1 = vsel %vm180_vm4, %v1258_v63, -1e+30  ;;  %v551_v2 = vsel %vm183_vm7, %v546_v54, -1e+30  ;;  %v573_v3 = vsel %vm247_vm5, %v1264_v0, -inf }
 0x166   :  { %559 = vmax.xlane.f32.xlu2 %v558_v61  ;;  %v251_v4 = vsel %vm247_vm5, %v1269_v1, -inf  ;;  %v567_v6 = vsel %vm247_vm5, %v551_v2, -inf  ;;  %v552_v7 = vsel %vm184_vm8, %v546_v54, -1e+30  ;;  %v1296_v10 = vsel %vm179_vm9, %v1258_v63, -1e+30 }
 0x167   :  { %v570_v9 = vsel %vm247_vm5, %v552_v7, -inf  ;;  %v248_v11 = vsel %vm247_vm5, %v1296_v10, -inf  ;;  %v1319_v14 = vsel %vm181_vm3, %v1258_v63, -1e+30  ;;  %v1326_v16 = vsel %vm186_vm10, %v546_v54, -1e+30 }
 0x168   :  { %v254_v15 = vsel %vm247_vm5, %v1319_v14, -inf  ;;  %v576_v17 = vsel %vm247_vm5, %v1326_v16, -inf  ;;  %v1332_v18 = vsel %vm179_vm9, %v546_v54, -1e+30  ;;  %v1339_v20 = vsel %vm182_vm2, %v1258_v63, -1e+30 }
 0x169   :  { %v555_v19 = vsel %vm247_vm5, %v1332_v18, -inf  ;;  %v257_v25 = vsel %vm247_vm5, %v1339_v20, -inf  ;;  %v1346_v27 = vsel %vm183_vm7, %v1258_v63, -1e+30  ;;  %v1353_v30 = vsel %vm185_vm6, %v1258_v63, -1e+30 }
 0x16a   :  { %v260_v29 = vsel %vm247_vm5, %v1346_v27, -inf  ;;  %v1360_v32 = vsel %vm186_vm10, %v1258_v63, -1e+30  ;;  %v1383_v61 = vsel %vm184_vm8, %v1258_v63, -1e+30 }
 0x16b   :  { %v269_v34 = vsel %vm247_vm5, %v1360_v32, -inf }
 0x16d   :  { %574 = vmax.xlane.f32.xlu1 %v573_v3  ;;  %252 = vmax.xlane.f32.xlu0 %v251_v4  ;;  %v263_v3 = vsel %vm247_vm5, %v1383_v61, -inf }
 0x16e   :  { %568 = vmax.xlane.f32.xlu2 %v567_v6 }
 0x176   :  { %571 = vmax.xlane.f32.xlu2 %v570_v9 }
 0x17e   :  { %249 = vmax.xlane.f32.xlu2 %v248_v11 }
 0x181   :  { %937 = vrot.lane.b32.xlu0 %v936_v12, %s1015_s12 }
 0x186   :  { %932 = vrot.lane.b32.xlu1 %v931_v31, %s1015_s12  ;;  %v266_v31 = vsel %vm247_vm5, %v1353_v30, -inf }
 0x196   :  { %927 = vrot.lane.b32.xlu2 %v926_v39, %s1015_s12 }
 0x1ab   :  { %255 = vmax.xlane.f32.xlu0 %v254_v15 }
 0x1b0   :  { %577 = vmax.xlane.f32.xlu1 %v576_v17 }
 0x1b3   :  { %556 = vmax.xlane.f32.xlu0 %v555_v19 }
 0x1b8   :  { %258 = vmax.xlane.f32.xlu1 %v257_v25 }
 0x1c0   :  { %261 = vmax.xlane.f32.xlu1 %v260_v29 }
 0x1c8   :  { %267 = vmax.xlane.f32.xlu1 %v266_v31 }
 0x1d0   :  { %270 = vmax.xlane.f32.xlu1 %v269_v34 }
 0x1d8   :  { %v563_v35 = vpop.xlane.xlu0 %562  ;;  %v1366_v48 = vpop.xlane.xlu1 %565 }
 0x1d9   :  { %v581_v37 = vsub.f32 %v1241_v57, %v563_v35  ;;  %v560_v38 = vpop.xlane.xlu2 %559 }
 0x1da   :  { %v580_v39 = vsub.f32 %v1245_v58, %v560_v38 }
 0x1db   :  { %v591_v40 = vmul.f32 1.442695, %v581_v37 }
 0x1dc   :  { %v589_v41 = vmul.f32 1.442695, %v580_v39 }
 0x1dd   :  { %950 = vpow2.f32 %v591_v40 }
 0x1de   :  { %952 = vpow2.f32 %v589_v41 }
 0x1e0   :  { %v575_v4 = vpop.xlane.xlu1 %574  ;;  %v253_v19 = vpop.xlane.xlu0 %252 }
 0x1e1   :  { %v569_v42 = vpop.xlane.xlu2 %568  ;;  %v585_v11 = vsub.f32 %v1264_v0, %v575_v4  ;;  %v941_v0 = vpack.i.bf16 %v1186_v46, %v1182_v45 }
 0x1e2   :  { %v583_v43 = vsub.f32 %v551_v2, %v569_v42 }
 0x1e3   :  { %v951_v44 = vpop.eup %950  ;;  %v599_v63 = vmul.f32 1.442695, %v585_v11 }
 0x1e4   :  { %v953_v47 = vpop.eup %952  ;;  %v1370_v52 = vsel %vm181_vm3, %v951_v44, 0.0  ;;  %v595_v53 = vmul.f32 1.442695, %v583_v43 }
 0x1e5   :  { %v1374_v54 = vsel %vm180_vm4, %v953_v47, 0.0  ;;  %v617_v57 = vsel %vm247_vm5, %v1370_v52, 0.0 }
 0x1e6   :  { %v614_v58 = vsel %vm247_vm5, %v1374_v54, 0.0  ;;  %618 = vadd.xlane.f32.xlu2 %v617_v57  ;;  %954 = vpow2.f32 %v595_v53  ;;  %v582_v57 = vsub.f32 %v1237_v56, %v1366_v48 }
 0x1e7   :  { %615 = vadd.xlane.f32.xlu0 %v614_v58 }
 0x1e8   :  { %v593_v58 = vmul.f32 1.442695, %v582_v57 }
 0x1e9   :  { %v572_v59 = vpop.xlane.xlu2 %571 }
 0x1ea   :  { %v584_v60 = vsub.f32 %v552_v7, %v572_v59  ;;  %v273_v59 = vsub.f32 %v1269_v1, %v253_v19 }
 0x1ec   :  { %v597_v2 = vmul.f32 1.442695, %v584_v60  ;;  %v955_v6 = vpop.eup %954  ;;  %v282_v60 = vmul.f32 1.442695, %v273_v59 }
 0x1ed   :  { %v1391_v7 = vsel %vm183_vm7, %v955_v6, 0.0 }
 0x1ee   :  { %264 = vmax.xlane.f32.xlu2 %v263_v3  ;;  %956 = vpow2.f32 %v597_v2  ;;  %v623_v17 = vsel %vm247_vm5, %v1391_v7, 0.0 }
 0x1f1   :  { %v250_v9 = vpop.xlane.xlu2 %249 }
 0x1f2   :  { %v272_v12 = vsub.f32 %v1296_v10, %v250_v9 }
 0x1f3   :  { %v938_v40 = vpop.permute.xlu0 %937 }
 0x1f4   :  { %v280_v15 = vmul.f32 1.442695, %v272_v12  ;;  %v957_v25 = vpop.eup %956  ;;  %v939_v43 = vunpack.i.l.bf16 %v938_v40  ;;  %v940_v47 = vunpack.i.h.bf16 %v938_v40 }
 0x1f5   :  { %v1399_v34 = vsel %vm184_vm8, %v957_v25, 0.0 }
 0x1f6   :  { %958 = vpow2.f32 %v280_v15  ;;  %624 = vadd.xlane.f32.xlu2 %v623_v17  ;;  %v626_v45 = vsel %vm247_vm5, %v1399_v34, 0.0 }
 0x1f7   :  { %960 = vpow2.f32 %v599_v63 }
 0x1f8   :  { %v933_v10 = vpop.permute.xlu1 %932  ;;  %962 = vpow2.f32 %v593_v58 }
 0x1f9   :  { %v928_v29 = vpop.permute.xlu2 %927  ;;  %v934_v39 = vunpack.i.l.bf16 %v933_v10  ;;  %v935_v42 = vunpack.i.h.bf16 %v933_v10  ;;  %964 = vpow2.f32 %v282_v60 }
 0x1fa   :  { %v929_v31 = vunpack.i.l.bf16 %v928_v29  ;;  %v930_v37 = vunpack.i.h.bf16 %v928_v29 }
 0x1fb   :  { %942 = vrot.lane.b32.xlu0 %v941_v0, %s1015_s12 }
 0x1fc   :  { %v959_v35 = vpop.eup %958  ;;  %715 = vmatpush.msra.mxu1 %v929_v31  ;;  %910 = vmatpush.msra.mxu3 %v929_v31 }
 0x1fd   :  { %v1404_v38 = vsel %vm179_vm9, %v959_v35, 0.0  ;;  %v961_v41 = vpop.eup %960 }
 0x1fe   :  { %716 = vmatpush.msra.mxu1 %v930_v37  ;;  %v304_v46 = vsel %vm247_vm5, %v1404_v38, 0.0  ;;  %911 = vmatpush.msra.mxu3 %v930_v37  ;;  %v1412_v44 = vsel %vm185_vm6, %v961_v41, 0.0  ;;  %v963_v3 = vpop.eup %962 }
 0x1ff   :  { %627 = vadd.xlane.f32.xlu2 %v626_v45  ;;  %305 = vadd.xlane.f32.xlu1 %v304_v46  ;;  %v629_v53 = vsel %vm247_vm5, %v1412_v44, 0.0  ;;  %v1422_v6 = vsel %vm182_vm2, %v963_v3, 0.0  ;;  %v965_v15 = vpop.eup %964 }
 0x200   :  { %717 = vmatpush.msra.mxu1 %v934_v39  ;;  %912 = vmatpush.msra.mxu3 %v934_v39  ;;  %v620_v56 = vsel %vm247_vm5, %v1422_v6, 0.0 }
 0x202   :  { %718 = vmatpush.msra.mxu1 %v935_v42  ;;  %913 = vmatpush.msra.mxu3 %v935_v42 }
 0x204   :  { %719 = vmatpush.msra.mxu1 %v939_v43  ;;  %914 = vmatpush.msra.mxu3 %v939_v43 }
 0x206   :  { %720 = vmatpush.msra.mxu1 %v940_v47  ;;  %915 = vmatpush.msra.mxu3 %v940_v47 }
 0x207   :  { %630 = vadd.xlane.f32.xlu2 %v629_v53 }
 0x21e   :  { %v256_v2 = vpop.xlane.xlu0 %255 }
 0x21f   :  { %v274_v4 = vsub.f32 %v1319_v14, %v256_v2  ;;  %v1430_v14 = vsel %vm180_vm4, %v965_v15, 0.0  ;;  %v121_v15 = vld [vmem:[%s1742_s5 + $0x30] sm:$0xff] }
 0x220   :  { %v307_v25 = vsel %vm247_vm5, %v1430_v14, 0.0 }
 0x221   :  { %v284_v12 = vmul.f32 1.442695, %v274_v4 }
 0x223   :  { %v578_v9 = vpop.xlane.xlu1 %577 }
 0x224   :  { %v586_v11 = vsub.f32 %v1326_v16, %v578_v9 }
 0x225   :  { %621 = vadd.xlane.f32.xlu0 %v620_v56 }
 0x226   :  { %v601_v48 = vmul.f32 1.442695, %v586_v11  ;;  %v557_v1 = vpop.xlane.xlu0 %556 }
 0x227   :  { %v579_v63 = vsub.f32 %v1332_v18, %v557_v1  ;;  %v117_v1 = vld [vmem:[%s1742_s5 + $0x10] sm:$0xff] }
 0x228   :  { %966 = vpow2.f32 %v601_v48 }
 0x229   :  { %968 = vpow2.f32 %v284_v12  ;;  %v587_v16 = vmul.f32 1.442695, %v579_v63  ;;  %v118_v12 = vld [vmem:[%s1742_s5 + $0x18] sm:$0xff] }
 0x22b   :  { %v259_v17 = vpop.xlane.xlu1 %258 }
 0x22c   :  { %v275_v19 = vsub.f32 %v1339_v20, %v259_v17 }
 0x22d   :  { %308 = vadd.xlane.f32.xlu0 %v307_v25 }
 0x22e   :  { %v967_v29 = vpop.eup %966  ;;  %v286_v31 = vmul.f32 1.442695, %v275_v19 }
 0x22f   :  { %v969_v0 = vpop.eup %968  ;;  %v1437_v10 = vsel %vm186_vm10, %v967_v29, 0.0 }
 0x230   :  { %970 = vpow2.f32 %v286_v31  ;;  %v632_v51 = vsel %vm247_vm5, %v1437_v10, 0.0  ;;  %v1443_v18 = vsel %vm181_vm3, %v969_v0, 0.0  ;;  %v120_v31 = vld [vmem:[%s1742_s5 + $0x28] sm:$0xff] }
 0x231   :  { %972 = vpow2.f32 %v587_v16  ;;  %633 = vadd.xlane.f32.xlu2 %v632_v51  ;;  %v310_v37 = vsel %vm247_vm5, %v1443_v18, 0.0 }
 0x233   :  { %v262_v20 = vpop.xlane.xlu1 %261 }
 0x234   :  { %v276_v35 = vsub.f32 %v1346_v27, %v262_v20 }
 0x235   :  { %311 = vadd.xlane.f32.xlu0 %v310_v37 }
 0x236   :  { %v971_v39 = vpop.eup %970  ;;  %v288_v45 = vmul.f32 1.442695, %v276_v35 }
 0x237   :  { %v973_v46 = vpop.eup %972  ;;  %v1450_v40 = vsel %vm182_vm2, %v971_v39, 0.0 }
 0x238   :  { %974 = vpow2.f32 %v288_v45  ;;  %v313_v50 = vsel %vm247_vm5, %v1450_v40, 0.0  ;;  %v1456_v41 = vsel %vm179_vm9, %v973_v46, 0.0  ;;  %v947_v45 = vld [vmem:[%s1740_s7] ss:$0 sm:$0xff] }
 0x239   :  { %314 = vadd.xlane.f32.xlu1 %v313_v50  ;;  %v611_v43 = vsel %vm247_vm5, %v1456_v41, 0.0  ;;  %v122_v50 = vld [vmem:[%s1742_s5 + $0x38] sm:$0xff] }
 0x23b   :  { %v268_v27 = vpop.xlane.xlu1 %267 }
 0x23c   :  { %v278_v42 = vsub.f32 %v1353_v30, %v268_v27 }
 0x23d   :  { %612 = vadd.xlane.f32.xlu0 %v611_v43 }
 0x23e   :  { %v975_v47 = vpop.eup %974  ;;  %v292_v53 = vmul.f32 1.442695, %v278_v42 }
 0x23f   :  { %v1463_v49 = vsel %vm183_vm7, %v975_v47, 0.0 }
 0x240   :  { %976 = vpow2.f32 %v292_v53  ;;  %v316_v57 = vsel %vm247_vm5, %v1463_v49, 0.0 }
 0x241   :  { %317 = vadd.xlane.f32.xlu2 %v316_v57 }
 0x243   :  { %v271_v8 = vpop.xlane.xlu1 %270 }
 0x244   :  { %v279_v58 = vsub.f32 %v1360_v32, %v271_v8 }
 0x246   :  { %v977_v59 = vpop.eup %976  ;;  %v294_v30 = vmul.f32 1.442695, %v279_v58 }
 0x247   :  { %v1470_v60 = vsel %vm185_vm6, %v977_v59, 0.0 }
 0x248   :  { %978 = vpow2.f32 %v294_v30  ;;  %v322_v62 = vsel %vm247_vm5, %v1470_v60, 0.0 }
 0x249   :  { %323 = vadd.xlane.f32.xlu0 %v322_v62 }
 0x24e   :  { %v979_v2 = vpop.eup %978 }
 0x24f   :  { %v1476_v3 = vsel %vm186_vm10, %v979_v2, 0.0 }
 0x250   :  { %v325_v4 = vsel %vm247_vm5, %v1476_v3, 0.0 }
 0x251   :  { %326 = vadd.xlane.f32.xlu2 %v325_v4 }
 0x259   :  { %v619_v32 = vpop.xlane.xlu2 %618 }
 0x25a   :  { %v616_v9 = vpop.xlane.xlu0 %615  ;;  %v637_v17 = vmax.f32 %v619_v32, 1e-20  ;;  %v949_v32 = vld [vmem:[%s1741_s6] ss:$0 sm:$0xff] }
 0x25b   :  { %v636_v56 = vmax.f32 %v616_v9, 1e-20 }
 0x25d   :  { %424 = vperm.xlu0 %923, %v116_v55  }
 0x261   :  { %v265_v11 = vpop.xlane.xlu2 %264 }
 0x262   :  { %v277_v13 = vsub.f32 %v1383_v61, %v265_v11 }
 0x264   :  { %v290_v48 = vmul.f32 1.442695, %v277_v13 }
 0x265   :  { %434 = vperm.xlu0 %923, %v118_v12  }
 0x266   :  { %980 = vpow2.f32 %v290_v48 }
 0x267   :  { %982 = vrcp.f32 %v636_v56 }
 0x268   :  { %984 = vrcp.f32 %v637_v17 }
 0x269   :  { %429 = vperm.xlu2 %925, %v117_v1   ;;  %v625_v46 = vpop.xlane.xlu2 %624 }
 0x26a   :  { %v639_v43 = vmax.f32 %v625_v46, 1e-20 }
 0x26c   :  { %v981_v63 = vpop.eup %980 }
 0x26d   :  { %449 = vperm.xlu0 %923, %v121_v15   ;;  %v943_v19 = vpop.permute.xlu0 %942  ;;  %v1495_v61 = vsel %vm184_vm8, %v981_v63, 0.0  ;;  %v983_v16 = vpop.eup %982 }
 0x26e   :  { %v944_v25 = vunpack.i.l.bf16 %v943_v19  ;;  %v319_v29 = vsel %vm247_vm5, %v1495_v61, 0.0  ;;  %v945_v0 = vunpack.i.h.bf16 %v943_v19  ;;  %v652_v51 = vmul.f32 %v983_v16, %v1374_v54  ;;  %v985_v35 = vpop.eup %984 }
 0x26f   :  { %320 = vadd.xlane.f32.xlu1 %v319_v29  ;;  %v653_v37 = vmul.f32 %v985_v35, %v1370_v52  ;;  %v115_v52 = vld [vmem:[%s1742_s5] sm:$0xff] }
 0x270   :  { %721 = vmatpush.msra.mxu1 %v944_v25  ;;  %916 = vmatpush.msra.mxu3 %v944_v25 }
 0x271   :  { %444 = vperm.xlu2 %925, %v120_v31  }
 0x272   :  { %v306_v5 = vpop.xlane.xlu1 %305  ;;  %722 = vmatpush.msra.mxu1 %v945_v0  ;;  %917 = vmatpush.msra.mxu3 %v945_v0  ;;  %v628_v27 = vpop.xlane.xlu2 %627 }
 0x273   :  { %v328_v20 = vmax.f32 %v306_v5, 1e-20  ;;  %895 = vmatmul.msk.f32.vlgmr.msra.gmra.mxu3 %vm247_vm5, %v652_v51  ;;  %v640_v58 = vmax.f32 %v628_v27, 1e-20 }
 0x275   :  { %758 = vrot.lane.b32.xlu0 %v1134_v22, %s1016_s2  ;;  %986 = vrcp.f32 %v328_v20 }
 0x279   :  { %756 = vrot.lane.b32.xlu2 %v1132_v21, %s1016_s2 }
 0x27a   :  { %v631_v8 = vpop.xlane.xlu2 %630 }
 0x27b   :  { %v987_v39 = vpop.eup %986  ;;  %896 = vmatmul.msk.f32.gmra.mxu3 %vm247_vm5, %v653_v37 }
 0x27c   :  { %v344_v54 = vmul.f32 %v987_v39, %v1404_v38  ;;  %v119_v38 = vld [vmem:[%s1742_s5 + $0x20] sm:$0xff] }
 0x27d   :  { %764 = vrot.lane.b32.xlu0 %v1140_v26, %s1016_s2 }
 0x27e   :  { %886 = vmatmul.msk.f32.vlgmr.msrb.gmra.mxu1 %vm247_vm5, %v344_v54 }
 0x281   :  { %762 = vrot.lane.b32.xlu2 %v1138_v24, %s1016_s2 }
 0x285   :  { %770 = vrot.lane.b32.xlu0 %v1154_v36, %s1016_s2 }
 0x288   :  { %419 = vperm.xlu1 %924, %v115_v52  }
 0x289   :  { %768 = vrot.lane.b32.xlu2 %v1152_v33, %s1016_s2 }
 0x28d   :  { %473 = vrot.lane.b32.xlu0 %v1132_v21, %s1017_s23 }
 0x290   :  { %439 = vperm.xlu1 %924, %v119_v38  }
 0x291   :  { %805 = vrot.lane.b32.xlu2 %v947_v45, %s1015_s12 }
 0x295   :  { %479 = vrot.lane.b32.xlu0 %v1138_v24, %s1017_s23 }
 0x298   :  { %v622_v21 = vpop.xlane.xlu0 %621  ;;  %454 = vperm.xlu1 %924, %v122_v50  }
 0x299   :  { %v638_v42 = vmax.f32 %v622_v21, 1e-20  ;;  %477 = vrot.lane.b32.xlu2 %v1136_v23, %s1017_s23  ;;  %v1597_v21 = vld [vmem:[%s1741_s6] ss:$0 sm:$0xff] }
 0x29b   :  { %988 = vrcp.f32 %v638_v42  ;;  %v1604_v42 = vld [vmem:[%s1740_s7] ss:$0 sm:$0xff]  ;;  %s1018_s7 = smov 16  }
 0x29c   :  { %990 = vrcp.f32 %v639_v43 }
 0x29d   :  { %485 = vrot.lane.b32.xlu0 %v1152_v33, %s1017_s23 }
 0x2a0   :  { %v309_v47 = vpop.xlane.xlu0 %308  ;;  %760 = vrot.lane.b32.xlu1 %v1136_v23, %s1016_s2 }
 0x2a1   :  { %v989_v24 = vpop.eup %988  ;;  %v329_v53 = vmax.f32 %v309_v47, 1e-20  ;;  %483 = vrot.lane.b32.xlu2 %v1142_v28, %s1017_s23 }
 0x2a2   :  { %v654_v57 = vmul.f32 %v989_v24, %v1422_v6  ;;  %v991_v59 = vpop.eup %990 }
 0x2a3   :  { %992 = vrcp.f32 %v329_v53  ;;  %v655_v2 = vmul.f32 %v991_v59, %v1391_v7 }
 0x2a4   :  { %897 = vmatmul.msk.f32.gmra.mxu3 %vm247_vm5, %v654_v57  ;;  %994 = vrcp.f32 %v640_v58  ;;  %v634_v4 = vpop.xlane.xlu2 %633 }
 0x2a5   :  { %v642_v1 = vmax.f32 %v634_v4, 1e-20 }
 0x2a8   :  { %v312_v33 = vpop.xlane.xlu0 %311  ;;  %766 = vrot.lane.b32.xlu1 %v1142_v28, %s1016_s2  ;;  %v641_v28 = vmax.f32 %v631_v8, 1e-20 }
 0x2a9   :  { %v993_v30 = vpop.eup %992  ;;  %v330_v23 = vmax.f32 %v312_v33, 1e-20 }
 0x2aa   :  { %v345_v62 = vmul.f32 %v993_v30, %v1430_v14  ;;  %v995_v9 = vpop.eup %994 }
 0x2ab   :  { %996 = vrcp.f32 %v330_v23  ;;  %v656_v13 = vmul.f32 %v995_v9, %v1399_v34 }
 0x2ac   :  { %v315_v6 = vpop.xlane.xlu1 %314  ;;  %887 = vmatmul.msk.f32.vlgmr.msra.gmra.mxu2 %vm247_vm5, %v345_v62  ;;  %898 = vmatmul.msk.f32.gmra.mxu3 %vm247_vm5, %v655_v2 }
 0x2ad   :  { %v331_v55 = vmax.f32 %v315_v6, 1e-20 }
 0x2af   :  { %998 = vrcp.f32 %v331_v55 }
 0x2b0   :  { %v613_v11 = vpop.xlane.xlu0 %612  ;;  %791 = vrot.lane.b32.xlu1 %v949_v32, %s1015_s12  ;;  %1000 = vrcp.f32 %v641_v28 }
 0x2b1   :  { %v997_v14 = vpop.eup %996  ;;  %v635_v7 = vmax.f32 %v613_v11, 1e-20 }
 0x2b2   :  { %v346_v12 = vmul.f32 %v997_v14, %v1443_v18 }
 0x2b3   :  { %1002 = vrcp.f32 %v635_v7 }
 0x2b4   :  { %v318_v56 = vpop.xlane.xlu2 %317  ;;  %888 = vmatmul.msk.f32.gmra.mxu2 %vm247_vm5, %v346_v12  ;;  %899 = vmatmul.msk.f32.gmra.mxu3 %vm247_vm5, %v656_v13 }
 0x2b5   :  { %v332_v48 = vmax.f32 %v318_v56, 1e-20  ;;  %v999_v15 = vpop.eup %998 }
 0x2b6   :  { %v1001_v63 = vpop.eup %1000  ;;  %v347_v34 = vmul.f32 %v999_v15, %v1450_v40 }
 0x2b7   :  { %1004 = vrcp.f32 %v332_v48  ;;  %v657_v19 = vmul.f32 %v1001_v63, %v1412_v44 }
 0x2b8   :  { %475 = vrot.lane.b32.xlu1 %v1134_v22, %s1017_s23  ;;  %1006 = vrcp.f32 %v642_v1 }
 0x2b9   :  { %v1003_v17 = vpop.eup %1002 }
 0x2ba   :  { %v651_v18 = vmul.f32 %v1003_v17, %v1456_v41 }
 0x2bc   :  { %889 = vmatmul.msk.f32.gmra.mxu2 %vm247_vm5, %v347_v34  ;;  %894 = vmatmul.msk.f32.vlgmr.msra.gmra.mxu1 %vm247_vm5, %v651_v18  ;;  %v324_v44 = vpop.xlane.xlu0 %323 }
 0x2bd   :  { %900 = vmatmul.msk.f32.gmra.mxu3 %vm247_vm5, %v657_v19  ;;  %v1005_v16 = vpop.eup %1004  ;;  %v334_v51 = vmax.f32 %v324_v44, 1e-20 }
 0x2be   :  { %v1007_v25 = vpop.eup %1006  ;;  %v348_v22 = vmul.f32 %v1005_v16, %v1463_v49 }
 0x2bf   :  { %v658_v29 = vmul.f32 %v1007_v25, %v1437_v10 }
 0x2c0   :  { %481 = vrot.lane.b32.xlu1 %v1140_v26, %s1017_s23 }
 0x2c4   :  { %890 = vmatmul.msk.f32.gmra.mxu2 %vm247_vm5, %v348_v22  ;;  %v327_v10 = vpop.xlane.xlu2 %326 }
 0x2c5   :  { %901 = vmatmul.msk.f32.gmra.mxu3 %vm247_vm5, %v658_v29 }
 0x2c8   :  { %487 = vrot.lane.b32.xlu1 %v1154_v36, %s1017_s23  ;;  %v335_v36 = vmax.f32 %v327_v10, 1e-20 }
 0x2cc   :  { %v430_v39 = vpop.permute.xlu2 %429 }
 0x2cf   :  { %v1577_v40 = vpop.permute.xlu0 %424 }
 0x2d4   :  { %v1591_v50 = vpop.permute.xlu2 %444 }
 0x2d7   :  { %v1579_v41 = vpop.permute.xlu0 %434 }
 0x2dc   :  { %v757_v57 = vpop.permute.xlu2 %756 }
 0x2df   :  { %v1581_v31 = vpop.permute.xlu0 %449 }
 0x2e2   :  { %v321_v0 = vpop.xlane.xlu1 %320 }
 0x2e3   :  { %v333_v26 = vmax.f32 %v321_v0, 1e-20 }
 0x2e4   :  { %v763_v58 = vpop.permute.xlu2 %762 }
 0x2e5   :  { %1008 = vrcp.f32 %v333_v26 }
 0x2e6   :  { %1010 = vrcp.f32 %v334_v51 }
 0x2e7   :  { %v759_v49 = vpop.permute.xlu0 %758  ;;  %1012 = vrcp.f32 %v335_v36 }
 0x2eb   :  { %v1009_v5 = vpop.eup %1008 }
 0x2ec   :  { %v349_v20 = vmul.f32 %v1009_v5, %v1495_v61  ;;  %v1011_v37 = vpop.eup %1010  ;;  %v1616_v30 = vpop.permute.xlu2 %768 }
 0x2ed   :  { %v350_v54 = vmul.f32 %v1011_v37, %v1470_v60  ;;  %v1013_v38 = vpop.eup %1012 }
 0x2ee   :  { %891 = vmatmul.msk.f32.gmra.mxu2 %vm247_vm5, %v349_v20  ;;  %v351_v61 = vmul.f32 %v1013_v38, %v1476_v3 }
 0x2ef   :  { %v765_v35 = vpop.permute.xlu0 %764 }
 0x2f4   :  { %v1623_v11 = vpop.permute.xlu2 %805 }
 0x2f6   :  { %892 = vmatmul.msk.f32.gmra.mxu2 %vm247_vm5, %v350_v54  ;;  %v727_v59 = vpop.f32.mrf.mxu3 }
 0x2f7   :  { %v1587_v52 = vpop.permute.xlu0 %770  ;;  %v749_v2 = vmul.f32 %v727_v59, %v1577_v40 }
 0x2f9   :  { %v781_v6 = vadd.f32 %v759_v49, %v749_v2 }
 0x2fa   :  { %v1589_v45 = vpop.permute.xlu1 %419 }
 0x2fb   :  { %v393_v46 = vpop.f32.mrf.mxu1 }
 0x2fc   :  { %v457_v27 = vmul.f32 %v1589_v45, %v393_v46  ;;  %v478_v51 = vpop.permute.xlu2 %477 }
 0x2fe   :  { %893 = vmatmul.msk.f32.gmra.mxu2 %vm247_vm5, %v351_v61  ;;  %v730_v62 = vpop.f32.mrf.mxu3 }
 0x2ff   :  { %v474_v60 = vpop.permute.xlu0 %473  ;;  %v750_v4 = vmul.f32 %v730_v62, %v430_v39 }
 0x300   :  { %v497_v43 = vadd.f32 %v474_v60, %v457_v27 }
 0x302   :  { %v509_v47 = vmul.f32 %v1597_v21, %v497_v43  ;;  %v1607_v24 = vpop.permute.xlu1 %439 }
 0x304   :  { %v521_v3 = vadd.f32 %v1604_v42, %v509_v47 }
 0x306   :  { %v529_v53 = vmax.f32 %v521_v3, 0.0 }
 0x307   :  { %v480_v59 = vpop.permute.xlu0 %479 }
 0x308   :  { %538 = vst.msk [vmem:[%s1743_s8] sm:$0xff] %vm537_vm11, %v529_v53 }
 0x30a   :  { %v1614_v8 = vpop.permute.xlu1 %454 }
 0x312   :  { %v761_v33 = vpop.permute.xlu1 %760 }
 0x313   :  { %v782_v32 = vadd.f32 %v761_v33, %v750_v4 }
 0x31a   :  { %v767_v23 = vpop.permute.xlu1 %766 }
 0x322   :  { %v1619_v55 = vpop.permute.xlu1 %791 }
 0x323   :  { %v795_v28 = vmul.f32 %v1619_v55, %v781_v6  ;;  %v796_v9 = vmul.f32 %v1619_v55, %v782_v32 }
 0x325   :  { %v809_v14 = vadd.f32 %v1623_v11, %v795_v28  ;;  %v810_v7 = vadd.f32 %v1623_v11, %v796_v9 }
 0x327   :  { %v733_v12 = vpop.f32.mrf.mxu3  ;;  %v817_v13 = vmax.f32 %v809_v14, 0.0  ;;  %v818_v56 = vmax.f32 %v810_v7, 0.0 }
 0x328   :  { %v751_v10 = vmul.f32 %v733_v12, %v1579_v41 }
 0x329   :  { %834 = vrot.lane.b32.xlu0 %v817_v13, %s1018_s7  ;;  %836 = vrot.lane.b32.xlu1 %v818_v56, %s1018_s7 }
 0x32a   :  { %v476_v17 = vpop.permute.xlu1 %475  ;;  %v783_v38 = vadd.f32 %v763_v58, %v751_v10 }
 0x32c   :  { %v797_v33 = vmul.f32 %v1619_v55, %v783_v38 }
 0x32e   :  { %v811_v4 = vadd.f32 %v1623_v11, %v797_v33 }
 0x32f   :  { %v396_v48 = vpop.f32.mrf.mxu2  ;;  %v736_v1 = vpop.f32.mrf.mxu3 }
 0x330   :  { %v458_v15 = vmul.f32 %v1577_v40, %v396_v48  ;;  %v752_v63 = vmul.f32 %v736_v1, %v1607_v24  ;;  %v819_v56 = vmax.f32 %v811_v4, 0.0 }
 0x332   :  { %v498_v18 = vadd.f32 %v476_v17, %v458_v15  ;;  %v784_v34 = vadd.f32 %v765_v35, %v752_v63  ;;  %v482_v14 = vpop.permute.xlu1 %481 }
 0x334   :  { %v510_v19 = vmul.f32 %v1597_v21, %v498_v18  ;;  %v798_v16 = vmul.f32 %v1619_v55, %v784_v34 }
 0x336   :  { %v522_v25 = vadd.f32 %v1604_v42, %v510_v19  ;;  %v812_v22 = vadd.f32 %v1623_v11, %v798_v16  ;;  %v484_v19 = vpop.permute.xlu2 %483 }
 0x337   :  { %v399_v29 = vpop.f32.mrf.mxu2  ;;  %v739_v44 = vpop.f32.mrf.mxu3 }
 0x338   :  { %v530_v0 = vmax.f32 %v522_v25, 0.0  ;;  %v459_v26 = vmul.f32 %v430_v39, %v399_v29  ;;  %v753_v49 = vmul.f32 %v739_v44, %v1591_v50  ;;  %v820_v40 = vmax.f32 %v812_v22, 0.0 }
 0x339   :  { %v724_v5 = vpop.f32.mrf.mxu1 }
 0x33a   :  { %v499_v20 = vadd.f32 %v478_v51, %v459_v26  ;;  %v785_v35 = vadd.f32 %v767_v23, %v753_v49  ;;  %v748_v36 = vmul.f32 %v724_v5, %v1589_v45  ;;  %840 = vrot.lane.b32.xlu0 %v820_v40, %s1018_s7  ;;  %539 = vst.msk [vmem:[%s1743_s8 + $0x8] sm:$0xff] %vm537_vm11, %v530_v0  ;;  %v486_v0 = vpop.permute.xlu0 %485  ;;  %v488_v5 = vpop.permute.xlu1 %487 }
 0x33c   :  { %v511_v37 = vmul.f32 %v1597_v21, %v499_v20  ;;  %v799_v39 = vmul.f32 %v1619_v55, %v785_v35  ;;  %v780_v54 = vadd.f32 %v757_v57, %v748_v36 }
 0x33e   :  { %v523_v46 = vadd.f32 %v1604_v42, %v511_v37  ;;  %v794_v61 = vmul.f32 %v1619_v55, %v780_v54  ;;  %v813_v27 = vadd.f32 %v1623_v11, %v799_v39 }
 0x33f   :  { %v402_v45 = vpop.f32.mrf.mxu2 }
 0x340   :  { %v531_v60 = vmax.f32 %v523_v46, 0.0  ;;  %v460_v43 = vmul.f32 %v1579_v41, %v402_v45  ;;  %v742_v47 = vpop.f32.mrf.mxu3  ;;  %v821_v3 = vmax.f32 %v813_v27, 0.0  ;;  %v808_v53 = vadd.f32 %v1623_v11, %v794_v61 }
 0x341   :  { %v754_v57 = vmul.f32 %v742_v47, %v1581_v31 }
 0x342   :  { %v500_v23 = vadd.f32 %v480_v59, %v460_v43  ;;  %842 = vrot.lane.b32.xlu1 %v821_v3, %s1018_s7  ;;  %v816_v58 = vmax.f32 %v808_v53, 0.0  ;;  %540 = vst.msk [vmem:[%s1743_s8 + $0x10] sm:$0xff] %vm537_vm11, %v531_v60 }
 0x343   :  { %v786_v2 = vadd.f32 %v1616_v30, %v754_v57 }
 0x344   :  { %v512_v41 = vmul.f32 %v1597_v21, %v500_v23  ;;  %832 = vrot.lane.b32.xlu2 %v816_v58, %s1018_s7 }
 0x345   :  { %v800_v12 = vmul.f32 %v1619_v55, %v786_v2 }
 0x346   :  { %v524_v62 = vadd.f32 %v1604_v42, %v512_v41 }
 0x347   :  { %v405_v6 = vpop.f32.mrf.mxu2  ;;  %v814_v15 = vadd.f32 %v1623_v11, %v800_v12 }
 0x348   :  { %v532_v32 = vmax.f32 %v524_v62, 0.0  ;;  %v461_v28 = vmul.f32 %v1607_v24, %v405_v6  ;;  %v745_v9 = vpop.f32.mrf.mxu3 }
 0x349   :  { %v755_v7 = vmul.f32 %v745_v9, %v1614_v8  ;;  %v822_v34 = vmax.f32 %v814_v15, 0.0 }
 0x34a   :  { %v501_v13 = vadd.f32 %v482_v14, %v461_v28  ;;  %541 = vst.msk [vmem:[%s1743_s8 + $0x18] sm:$0xff] %vm537_vm11, %v532_v32 }
 0x34b   :  { %v787_v30 = vadd.f32 %v1587_v52, %v755_v7 }
 0x34c   :  { %v513_v48 = vmul.f32 %v1597_v21, %v501_v13  ;;  %838 = vrot.lane.b32.xlu2 %v819_v56, %s1018_s7 }
 0x34d   :  { %v801_v24 = vmul.f32 %v1619_v55, %v787_v30 }
 0x34e   :  { %v525_v1 = vadd.f32 %v1604_v42, %v513_v48 }
 0x34f   :  { %v815_v63 = vadd.f32 %v1623_v11, %v801_v24 }
 0x350   :  { %v533_v17 = vmax.f32 %v525_v1, 0.0 }
 0x351   :  { %v823_v18 = vmax.f32 %v815_v63, 0.0 }
 0x352   :  { %542 = vst.msk [vmem:[%s1743_s8 + $0x20] sm:$0xff] %vm537_vm11, %v533_v17 }
 0x353   :  { %846 = vrot.lane.b32.xlu0 %v823_v18, %s1018_s7 }
 0x354   :  { %844 = vrot.lane.b32.xlu2 %v822_v34, %s1018_s7 }
 0x371   :  { %v408_v52 = vpop.f32.mrf.mxu2 }
 0x372   :  { %v462_v55 = vmul.f32 %v1591_v50, %v408_v52 }
 0x374   :  { %v502_v16 = vadd.f32 %v484_v19, %v462_v55 }
 0x376   :  { %v514_v25 = vmul.f32 %v1597_v21, %v502_v16 }
 0x378   :  { %v526_v11 = vadd.f32 %v1604_v42, %v514_v25 }
 0x379   :  { %v411_v22 = vpop.f32.mrf.mxu2 }
 0x37a   :  { %v534_v29 = vmax.f32 %v526_v11, 0.0  ;;  %v463_v44 = vmul.f32 %v1581_v31, %v411_v22 }
 0x37c   :  { %v503_v26 = vadd.f32 %v486_v0, %v463_v44  ;;  %543 = vst.msk [vmem:[%s1743_s8 + $0x28] sm:$0xff] %vm537_vm11, %v534_v29 }
 0x37e   :  { %v515_v49 = vmul.f32 %v1597_v21, %v503_v26 }
 0x380   :  { %v527_v50 = vadd.f32 %v1604_v42, %v515_v49 }
 0x381   :  { %v414_v40 = vpop.f32.mrf.mxu2 }
 0x382   :  { %v535_v51 = vmax.f32 %v527_v50, 0.0  ;;  %v464_v10 = vmul.f32 %v1614_v8, %v414_v40 }
 0x384   :  { %v504_v20 = vadd.f32 %v488_v5, %v464_v10  ;;  %544 = vst.msk [vmem:[%s1743_s8 + $0x30] sm:$0xff] %vm537_vm11, %v535_v51 }
 0x386   :  { %v516_v31 = vmul.f32 %v1597_v21, %v504_v20 }
 0x388   :  { %v528_v35 = vadd.f32 %v1604_v42, %v516_v31 }
 0x38a   :  { %v536_v36 = vmax.f32 %v528_v35, 0.0 }
 0x38c   :  { %545 = vst.msk [vmem:[%s1743_s8 + $0x38] sm:$0xff] %vm537_vm11, %v536_v36 }
 0x39b   :  { %v835_v37 = vpop.permute.xlu0 %834  ;;  %v837_v8 = vpop.permute.xlu1 %836 }
 0x39c   :  { %858 = vst.msk [vmem:[%s1743_s8 + $0x8] sm:$0xff] %vm856_vm12, %v835_v37 }
 0x39d   :  { %859 = vst.msk [vmem:[%s1743_s8 + $0x10] sm:$0xff] %vm856_vm12, %v837_v8 }
 0x39e   :  { %v833_v21 = vpop.permute.xlu2 %832 }
 0x39f   :  { %857 = vst.msk [vmem:[%s1743_s8] sm:$0xff] %vm856_vm12, %v833_v21 }
 0x3a6   :  { %v839_v42 = vpop.permute.xlu2 %838 }
 0x3a7   :  { %860 = vst.msk [vmem:[%s1743_s8 + $0x18] sm:$0xff] %vm856_vm12, %v839_v42 }
 0x3ac   :  { %v841_v39 = vpop.permute.xlu0 %840 }
 0x3ad   :  { %861 = vst.msk [vmem:[%s1743_s8 + $0x20] sm:$0xff] %vm856_vm12, %v841_v39 }
 0x3ae   :  { %v845_v54 = vpop.permute.xlu2 %844 }
 0x3af   :  { %863 = vst.msk [vmem:[%s1743_s8 + $0x30] sm:$0xff] %vm856_vm12, %v845_v54 }
 0x3b4   :  { %v843_v38 = vpop.permute.xlu1 %842 }
 0x3b5   :  { %862 = vst.msk [vmem:[%s1743_s8 + $0x28] sm:$0xff] %vm856_vm12, %v843_v38 }
 0x3c5   :  { %v847_v46 = vpop.permute.xlu0 %846 }
 0x3c6   :  { %864 = vst.msk [vmem:[%s1743_s8 + $0x38] sm:$0xff] %vm856_vm12, %v847_v46 }

</bundles_post_ra>
